<compile_context>
chip_gen: v5e
topology: v5e:2x2
jax: 0.10.0
libtpu: 0.0.40
codegen_flags: <defaults>
</compile_context>

<pallas_src>
import functools

import jax
import jax.numpy as jnp
from jax.experimental import pallas as pl
from jax.experimental.pallas import tpu as pltpu


def _round_up(n, m):
    return ((n + m - 1) // m) * m


def _cnn_kernel(x_ref, w_ref, b_ref, o_ref, *, n_chars, k, group_size,
                group_starts, e_word):
    # x_ref: (TB, L*C)      f32/bf16  TB words, char embeddings flattened over time
    # w_ref: (W, G*E)       bf16      block-banded conv weight (position-major)
    # b_ref: (1, E)         f32       conv bias
    # o_ref: (TB, E)                  untransposed output block
    C = n_chars
    G = group_size
    E = e_word
    W = (k + G - 1) * C                      # shared-window width in lanes

    xf = x_ref[...]
    if xf.dtype != jnp.bfloat16:             # bf16 operands for the MXU
        xf = xf.astype(jnp.bfloat16)
    w = w_ref[...]                           # (W, G*E)

    # One matmul per group of G output positions. Column block j of the banded
    # weight holds the conv weight at row offset j*C, so window @ w_banded gives
    # conv outputs for positions s..s+G-1 side by side. The running max across
    # groups is over identical column layouts -> pure VPU vmax, no slicing.
    acc = None
    for s in group_starts:                   # static ints, fully unrolled
        win = xf[:, s * C: s * C + W]        # (TB, W): only len(group_starts) slices
        r = jnp.dot(win, w, preferred_element_type=jnp.float32)   # (TB, G*E) MXU
        acc = r if acc is None else jnp.maximum(acc, r)

    # Within-group fold: combine the G position blocks into (TB, E). Done once
    # per grid step on small (TB, E) slices (<10% of the x traffic).
    pooled = acc[:, 0:E]
    for j in range(1, G):
        pooled = jnp.maximum(pooled, acc[:, j * E:(j + 1) * E])

    # bias-add and ReLU commute with the max (both monotone, bias per-channel).
    o_ref[...] = jnp.maximum(pooled + b_ref[...], 0.0).astype(o_ref.dtype)


def cnn_forward(x, weight, bias, *, tb=1024, group_size=None):
    """
    x:      (B, L, e_char)        float32 (or bfloat16 end-to-end)
    weight: (e_word, e_char, k)   float32  (PyTorch Conv1d layout)
    bias:   (e_word,)             float32
    returns (B, e_word)           x.dtype
    """
    B, L, C = x.shape
    E, Cw, k = weight.shape
    assert C == Cw
    L_out = L - k + 1
    assert L_out >= 1
    assert tb % 8 == 0

    # ---- group size: 6 on v6e/v7x, 4 on v5e (smaller MXU / lower HBM BW) ----
    if group_size is None:
        group_size = 6
        try:
            kind = jax.devices()[0].device_kind.lower()
            if "v5 lite" in kind or "v5e" in kind or "v5lite" in kind:
                group_size = 4
        except Exception:
            pass
    G = max(1, min(group_size, L_out))
    # Group start positions; the tail group is clamped so it overlaps the
    # previous one (overlap is harmless for a max). Covers 0..L_out-1.
    group_starts = tuple(sorted({min(s, L_out - G) for s in range(0, L_out, G)}))
    W = (k + G - 1) * C                      # shared-window lane width

    # ---- batch tiling: big tiles amortize per-step overhead; keep grid >= 2
    # for batches >= 256 so the "parallel" axis feeds both v7x TensorCores. ----
    B8 = _round_up(B, 8)
    TB = min(tb, B8)
    if B8 >= 256:
        TB = min(TB, _round_up(pl.cdiv(B8, 2), 8))
    Bp = _round_up(B, TB)

    # x as (B, L*C): identical memory layout, so this reshape is free.
    x2d = x.reshape(B, L * C)
    if Bp != B:
        x2d = jnp.pad(x2d, ((0, Bp - B), (0, 0)))

    # Block-banded weight (W, G*E): column block j holds the (k*C, E) conv
    # weight (tap-major, channel-minor) at row offset j*C, zeros elsewhere.
    w_mat = jnp.transpose(weight, (2, 1, 0)).reshape(k * C, E)
    blocks = [jnp.pad(w_mat, ((j * C, W - j * C - k * C), (0, 0))) for j in range(G)]
    w_banded = jnp.concatenate(blocks, axis=1).astype(jnp.bfloat16)
    b_2d = bias.reshape(1, E).astype(jnp.float32)

    kernel = functools.partial(_cnn_kernel, n_chars=C, k=k, group_size=G,
                               group_starts=group_starts, e_word=E)

    cost = pl.CostEstimate(
        flops=2 * Bp * len(group_starts) * W * (G * E),
        transcendentals=0,
        bytes_accessed=(Bp * L * C * x2d.dtype.itemsize
                        + w_banded.size * 2 + E * 4
                        + Bp * E * x.dtype.itemsize),
    )

    # Scoped-VMEM budget: double-buffered x block dominates. Stays at the 32 MiB
    # default for tb<=1024; capped at 100 MiB (keep tb<=1024 on v7x's 64 MiB).
    x_blk = TB * L * C * x2d.dtype.itemsize
    vmem_limit = int(1.5 * (2 * x_blk + 2 * TB * E * 4
                            + w_banded.size * 2 + 4 * TB * G * E * 4)) + (4 << 20)
    vmem_limit = min(max(vmem_limit, 32 << 20), 100 << 20)

    out = pl.pallas_call(
        kernel,
        out_shape=jax.ShapeDtypeStruct((Bp, E), x.dtype),
        grid_spec=pltpu.PrefetchScalarGridSpec(
            num_scalar_prefetch=0,
            grid=(Bp // TB,),
            in_specs=[
                pl.BlockSpec((TB, L * C), lambda i: (i, 0)),
                pl.BlockSpec((W, G * E), lambda i: (0, 0)),
                pl.BlockSpec((1, E), lambda i: (0, 0)),
            ],
            out_specs=pl.BlockSpec((TB, E), lambda i: (i, 0)),
        ),
        compiler_params=pltpu.CompilerParams(
            dimension_semantics=("parallel",),      # batch tiles shard across TCs
            vmem_limit_bytes=vmem_limit,
        ),
        cost_estimate=cost,
    )(x2d, w_banded, b_2d)

    return out[:B]


def _reference(x, weight, bias):
    """Pure-JAX f32 reference of the PyTorch forward (for the sanity check)."""
    B, L, C = x.shape
    E, _, k = weight.shape
    L_out = L - k + 1
    windows = jnp.stack([x[:, j:j + L_out, :] for j in range(k)], axis=-1)  # (B,L_out,C,k)
    conv = jnp.einsum("btcj,ecj->bte", windows, weight) + bias[None, None, :]
    return jnp.max(jax.nn.relu(conv), axis=1)  # (B, E)


if __name__ == "__main__":
    # Small shapes consistent with the module: e_char is fixed at 50 by __init__.
    batch_size = 6
    max_word_length = 16
    e_char = 50
    e_word = 32
    k = 5

    key = jax.random.PRNGKey(0)
    kx, kw, kb = jax.random.split(key, 3)

    x = jax.random.normal(kx, (batch_size, max_word_length, e_char), dtype=jnp.float32)
    # Deterministic synthetic Conv1d parameters (PyTorch layout: (out, in, k)).
    fan_in = e_char * k
    bound = 1.0 / (fan_in ** 0.5)
    weight = jax.random.uniform(kw, (e_word, e_char, k), jnp.float32, -bound, bound)
    bias = jax.random.uniform(kb, (e_word,), jnp.float32, -bound, bound)

    out = cnn_forward(x, weight, bias)
    jax.block_until_ready(out)
    ref = _reference(x, weight, bias)
    assert out.shape == (batch_size, e_word)
    # bf16 matmul operands (f32 accumulate) -> loosen the f32 tolerance.
    assert jnp.allclose(out, ref, atol=3e-2, rtol=3e-2)

    # Check 2: multi-tile grid + batch-remainder (padding) path.
    x2 = jax.random.normal(jax.random.PRNGKey(1),
                           (300, max_word_length, e_char), dtype=jnp.float32)
    out2 = cnn_forward(x2, weight, bias, tb=128)
    jax.block_until_ready(out2)
    ref2 = _reference(x2, weight, bias)
    assert out2.shape == (300, e_word)
    assert jnp.allclose(out2, ref2, atol=3e-2, rtol=3e-2)

    # Check 3: group size that does not divide L_out (overlapping tail group).
    out3 = cnn_forward(x, weight, bias, group_size=5)
    jax.block_until_ready(out3)
    assert jnp.allclose(out3, ref, atol=3e-2, rtol=3e-2)

    print("KERNEL_OK")
</pallas_src>

<mosaic_0001>
module attributes {stable_mosaic.version = 11 : i64} {
  func.func @_cnn_kernel(%arg0: i32, %arg1: memref<8x800xf32, #tpu.memory_space<vmem>>, %arg2: memref<500x192xbf16, #tpu.memory_space<vmem>>, %arg3: memref<1x32xf32, #tpu.memory_space<vmem>>, %arg4: memref<8x32xf32, #tpu.memory_space<vmem>>) attributes {dimension_semantics = [#tpu.dimension_semantics<parallel>], iteration_bounds = array<i64: 1>, scalar_prefetch = 0 : i64, scratch_operands = 0 : i64, tpu.core_type = #tpu.core_type<tc>, window_params = [{transform_indices = @transform_0, window_bounds = array<i64: 8, 800>}, {pipeline_mode = #tpu.pipeline_mode<synchronous>, transform_indices = @transform_1, window_bounds = array<i64: 500, 192>}, {pipeline_mode = #tpu.pipeline_mode<synchronous>, transform_indices = @transform_2, window_bounds = array<i64: 1, 32>}, {transform_indices = @transform_3, window_bounds = array<i64: 8, 32>}]} {
    %c0 = arith.constant 0 : index
    %c0_0 = arith.constant 0 : index
    %0 = vector.load %arg1[%c0, %c0_0] : memref<8x800xf32, #tpu.memory_space<vmem>>, vector<8x800xf32>
    %1 = arith.truncf %0 : vector<8x800xf32> to vector<8x800xbf16>
    %c0_1 = arith.constant 0 : index
    %c0_2 = arith.constant 0 : index
    %2 = vector.load %arg2[%c0_1, %c0_2] : memref<500x192xbf16, #tpu.memory_space<vmem>>, vector<500x192xbf16>
    %3 = vector.extract_strided_slice %1 {offsets = [0, 0], sizes = [8, 500], strides = [1, 1]} : vector<8x800xbf16> to vector<8x500xbf16>
    %cst = arith.constant dense<0.000000e+00> : vector<8x192xf32>
    %4 = tpu.matmul %3, %2, %cst {dimension_numbers = #tpu.dot_dimension_numbers<[1], [0], [0], [1], [0, 0, 1, 1], [], []>} : vector<8x500xbf16>, vector<500x192xbf16>, vector<8x192xf32> -> vector<8x192xf32>
    %5 = vector.extract_strided_slice %1 {offsets = [0, 300], sizes = [8, 500], strides = [1, 1]} : vector<8x800xbf16> to vector<8x500xbf16>
    %cst_3 = arith.constant dense<0.000000e+00> : vector<8x192xf32>
    %6 = tpu.matmul %5, %2, %cst_3 {dimension_numbers = #tpu.dot_dimension_numbers<[1], [0], [0], [1], [0, 0, 1, 1], [], []>} : vector<8x500xbf16>, vector<500x192xbf16>, vector<8x192xf32> -> vector<8x192xf32>
    %7 = arith.maximumf %4, %6 : vector<8x192xf32>
    %8 = vector.extract_strided_slice %7 {offsets = [0, 0], sizes = [8, 32], strides = [1, 1]} : vector<8x192xf32> to vector<8x32xf32>
    %9 = vector.extract_strided_slice %7 {offsets = [0, 32], sizes = [8, 32], strides = [1, 1]} : vector<8x192xf32> to vector<8x32xf32>
    %10 = arith.maximumf %8, %9 : vector<8x32xf32>
    %11 = vector.extract_strided_slice %7 {offsets = [0, 64], sizes = [8, 32], strides = [1, 1]} : vector<8x192xf32> to vector<8x32xf32>
    %12 = arith.maximumf %10, %11 : vector<8x32xf32>
    %13 = vector.extract_strided_slice %7 {offsets = [0, 96], sizes = [8, 32], strides = [1, 1]} : vector<8x192xf32> to vector<8x32xf32>
    %14 = arith.maximumf %12, %13 : vector<8x32xf32>
    %15 = vector.extract_strided_slice %7 {offsets = [0, 128], sizes = [8, 32], strides = [1, 1]} : vector<8x192xf32> to vector<8x32xf32>
    %16 = arith.maximumf %14, %15 : vector<8x32xf32>
    %17 = vector.extract_strided_slice %7 {offsets = [0, 160], sizes = [8, 32], strides = [1, 1]} : vector<8x192xf32> to vector<8x32xf32>
    %18 = arith.maximumf %16, %17 : vector<8x32xf32>
    %c0_4 = arith.constant 0 : index
    %c0_5 = arith.constant 0 : index
    %19 = vector.load %arg3[%c0_4, %c0_5] : memref<1x32xf32, #tpu.memory_space<vmem>>, vector<1x32xf32>
    %20 = vector.broadcast %19 : vector<1x32xf32> to vector<8x32xf32>
    %21 = arith.addf %18, %20 : vector<8x32xf32>
    %cst_6 = arith.constant 0.000000e+00 : f32
    %22 = vector.broadcast %cst_6 : f32 to vector<8x32xf32>
    %23 = arith.maximumf %21, %22 : vector<8x32xf32>
    %c0_7 = arith.constant 0 : index
    %c0_8 = arith.constant 0 : index
    %24 = vector.load %arg4[%c0_7, %c0_8] : memref<8x32xf32, #tpu.memory_space<vmem>>, vector<8x32xf32>
    tpu.vector_store %arg4[%c0_7, %c0_8], %23 {strides = array<i32>} : memref<8x32xf32, #tpu.memory_space<vmem>>, vector<8x32xf32>,
    return
  }
  func.func @transform_0(%arg0: i32) -> (i32, i32) {
    %c0_i32 = arith.constant 0 : i32
    %c0_i32_0 = arith.constant 0 : i32
    return %arg0, %c0_i32 : i32, i32
  }
  func.func @transform_1(%arg0: i32) -> (i32, i32) {
    %c0_i32 = arith.constant 0 : i32
    %c0_i32_0 = arith.constant 0 : i32
    %c0_i32_1 = arith.constant 0 : i32
    return %c0_i32, %c0_i32_0 : i32, i32
  }
  func.func @transform_2(%arg0: i32) -> (i32, i32) {
    %c0_i32 = arith.constant 0 : i32
    %c0_i32_0 = arith.constant 0 : i32
    %c0_i32_1 = arith.constant 0 : i32
    return %c0_i32, %c0_i32_0 : i32, i32
  }
  func.func @transform_3(%arg0: i32) -> (i32, i32) {
    %c0_i32 = arith.constant 0 : i32
    %c0_i32_0 = arith.constant 0 : i32
    return %arg0, %c0_i32 : i32, i32
  }
}

</mosaic_0001>

<bundles_post_ra>
// kernel: tpu_custom_call.1
= control target key start
LH: loop header
LB: loop body
LE: loop exit
PB: predicated region body
PF: predicated region fallthrough
CT: control target
= control target key end

     0   :  { %s1056_s23 = smov 84   ;;  %vm421_vm0 = vcmask 1041408   ;;  %vm417_vm1 = vcmask 949248   ;;  %s1776_s0 = inlined_call_operand.vmem [shape: f32[8,800], index: 0, kind: input, shape index: {}]   ;;  %s1777_s1 = inlined_call_operand.vmem [shape: bf16[500,192], index: 1, kind: input, shape index: {}]   ;;  %s1778_s2 = inlined_call_operand.vmem [shape: f32[1,32], index: 2, kind: input, shape index: {}]   ;;  %s1779_s3 = inlined_call_operand.hbm [shape: f32[8,32], index: 3, kind: output, shape index: {}]  }
   0x1   :  { %v21_v0 = vld [vmem:[%s1776_s0 + $0x30] sm:$0xff]  ;;  %v19_v1 = vld [vmem:[%s1776_s0 + $0x20] sm:$0xff]  ;;  %v20_v2 = vld [vmem:[%s1776_s0 + $0x28] sm:$0xff] }
   0x2   :  { %v25_v3 = vpack.c.bf16 %v21_v0, %v21_v0  ;;  %v24_v4 = vpack.c.bf16 %v20_v2, %v19_v1  ;;  %v17_v5 = vld [vmem:[%s1776_s0 + $0x10] sm:$0xff]  ;;  %v18_v6 = vld [vmem:[%s1776_s0 + $0x18] sm:$0xff]  ;;  %v824_v10 = vld [vmem:[%s1777_s1 + $0xe0] sm:$0xf] }
   0x3   :  { %v832_v7 = vld [vmem:[%s1777_s1 + $0xf0] sm:$0xf]  ;;  %v23_v8 = vpack.c.bf16 %v18_v6, %v17_v5  ;;  %v993_v9 = vld [vmem:[%s1777_s1 + $0xf4] sm:$0xf0]  ;;  %v991_v11 = vld [vmem:[%s1777_s1 + $0xe4] sm:$0xf0] }
   0x4   :  { %v536_v12 = vunpack.c.l.b16 %v25_v3  ;;  %v534_v13 = vunpack.c.l.b16 %v24_v4  ;;  %v1108_v14 = vor.u32 %v993_v9, %v832_v7  ;;  %v768_v15 = vld [vmem:[%s1777_s1 + $0x70] sm:$0xf]  ;;  %v977_v16 = vld [vmem:[%s1777_s1 + $0x74] sm:$0xf0]  ;;  %v1125_v23 = vor.u32 %v991_v11, %v824_v10  ;;  %v760_v25 = vld [vmem:[%s1777_s1 + $0x60] sm:$0xf] }
   0x5   :  { %v1116_v17 = vor.u32 %v977_v16, %v768_v15  ;;  %v896_v18 = vld [vmem:[%s1777_s1 + $0x170] sm:$0xf]  ;;  %v1009_v19 = vld [vmem:[%s1777_s1 + $0x174] sm:$0xf0]  ;;  %v94_v20 = vunpack.c.h.b16 %v23_v8  ;;  %v975_v26 = vld [vmem:[%s1777_s1 + $0x64] sm:$0xf0]  ;;  %v535_v33 = vunpack.c.h.b16 %v24_v4  ;;  %v93_v34 = vunpack.c.l.b16 %v23_v8 }
   0x6   :  { %v539_v21 = vpack.c.b16 %v536_v12, %v536_v12  ;;  %v537_v22 = vpack.c.b16 %v534_v13, %v534_v13  ;;  %441 = vmatpush.bf16.msra.mxu1 %v1108_v14  ;;  %v1130_v24 = vld [vmem:[%s1777_s1 + $0x1f0] sm:$0x33]  ;;  %v989_v28 = vld [vmem:[%s1777_s1 + $0xd4] sm:$0xf0]  ;;  %v1145_v29 = vor.u32 %v1009_v19, %v896_v18  ;;  %v888_v32 = vld [vmem:[%s1777_s1 + $0x160] sm:$0xf]  ;;  %v1155_v35 = vor.u32 %v975_v26, %v760_v25 }
   0x7   :  { %428 = vmatpush.bf16.msra.mxu0 %v1116_v17  ;;  %v816_v27 = vld [vmem:[%s1777_s1 + $0xd0] sm:$0xf]  ;;  %v289_v30 = vunpack.c.l.b16 %v1130_v24  ;;  %v1148_v31 = vpack.c.b16 %v94_v20, %v94_v20  ;;  %v1007_v36 = vld [vmem:[%s1777_s1 + $0x164] sm:$0xf0]  ;;  %v808_v38 = vld [vmem:[%s1777_s1 + $0xc0] sm:$0xf]  ;;  %v538_v50 = vpack.c.b16 %v535_v33, %v535_v33  ;;  %v1198_v51 = vpack.c.b16 %v93_v34, %v93_v34 }
   0x8   :  { %548 = vrot.lane.b32.xlu1 %v539_v21, %s1056_s23  ;;  %544 = vrot.lane.b32.xlu0 %v537_v22, %s1056_s23  ;;  %v1166_v39 = vor.u32 %v1007_v36, %v888_v32  ;;  %v752_v40 = vld [vmem:[%s1777_s1 + $0x50] sm:$0xf]  ;;  %v973_v41 = vld [vmem:[%s1777_s1 + $0x54] sm:$0xf0]  ;;  %v1175_v42 = vor.u32 %v989_v28, %v816_v27 }
   0x9   :  { %454 = vmatpush.bf16.msra.mxu2 %v1145_v29  ;;  %v353_v37 = vpack.c.b16 %v289_v30, %v289_v30  ;;  %542 = vrot.lane.b32.xlu2 %v1148_v31, %s1056_s23  ;;  %v952_v43 = vld [vmem:[%s1777_s1 + $0x1e0] sm:$0xf]  ;;  %v1023_v44 = vld [vmem:[%s1777_s1 + $0x1e4] sm:$0xf0]  ;;  %v880_v45 = vld [vmem:[%s1777_s1 + $0x150] sm:$0xf]  ;;  %v1193_v48 = vor.u32 %v973_v41, %v752_v40 }
   0xa   :  { %442 = vmatpush.bf16.msra.mxu1 %v1125_v23  ;;  %v987_v47 = vld [vmem:[%s1777_s1 + $0xc4] sm:$0xf0]  ;;  %v1005_v49 = vld [vmem:[%s1777_s1 + $0x154] sm:$0xf0]  ;;  %v744_v52 = vld [vmem:[%s1777_s1 + $0x40] sm:$0xf]  ;;  %v1208_v54 = vor.u32 %v1023_v44, %v952_v43 }
   0xb   :  { %v1187_v46 = vsel %vm421_vm0, %v353_v37, 0  ;;  %429 = vmatpush.bf16.msra.mxu0 %v1155_v35  ;;  %v971_v53 = vld [vmem:[%s1777_s1 + $0x44] sm:$0xf0]  ;;  %v1210_v55 = vor.u32 %v1005_v49, %v880_v45  ;;  %v944_v56 = vld [vmem:[%s1777_s1 + $0x1d0] sm:$0xf]  ;;  %v1216_v57 = vor.u32 %v987_v47, %v808_v38 }
   0xc   :  { %467 = vmatpush.bf16.msra.mxu3 %v1187_v46  ;;  %v1021_v58 = vld [vmem:[%s1777_s1 + $0x1d4] sm:$0xf0]  ;;  %v872_v59 = vld [vmem:[%s1777_s1 + $0x140] sm:$0xf]  ;;  %v1003_v60 = vld [vmem:[%s1777_s1 + $0x144] sm:$0xf0]  ;;  %v1234_v63 = vor.u32 %v971_v53, %v744_v52 }
   0xd   :  { %455 = vmatpush.bf16.msra.mxu2 %v1166_v39  ;;  %v800_v61 = vld [vmem:[%s1777_s1 + $0xb0] sm:$0xf]  ;;  %v985_v62 = vld [vmem:[%s1777_s1 + $0xb4] sm:$0xf0]  ;;  %v1247_v2 = vor.u32 %v1021_v58, %v944_v56  ;;  %v1249_v3 = vor.u32 %v1003_v60, %v872_v59  ;;  %v936_v4 = vld [vmem:[%s1777_s1 + $0x1c0] sm:$0xf] }
   0xe   :  { %443 = vmatpush.bf16.msra.mxu1 %v1175_v42  ;;  %v736_v0 = vld [vmem:[%s1777_s1 + $0x30] sm:$0xf]  ;;  %v969_v1 = vld [vmem:[%s1777_s1 + $0x34] sm:$0xf0]  ;;  %v1255_v5 = vor.u32 %v985_v62, %v800_v61  ;;  %v1019_v6 = vld [vmem:[%s1777_s1 + $0x1c4] sm:$0xf0] }
   0xf   :  { %430 = vmatpush.bf16.msra.mxu0 %v1193_v48  ;;  %v864_v7 = vld [vmem:[%s1777_s1 + $0x130] sm:$0xf]  ;;  %v1001_v8 = vld [vmem:[%s1777_s1 + $0x134] sm:$0xf0]  ;;  %v792_v9 = vld [vmem:[%s1777_s1 + $0xa0] sm:$0xf]  ;;  %v1273_v11 = vor.u32 %v969_v1, %v736_v0  ;;  %v1283_v15 = vor.u32 %v1019_v6, %v936_v4  ;;  %v290_v1 = vunpack.c.h.b16 %v1130_v24 }
  0x10   :  { %546 = vrot.lane.b32.xlu0 %v538_v50, %s1056_s23  ;;  %540 = vrot.lane.b32.xlu1 %v1198_v51, %s1056_s23  ;;  %v983_v10 = vld [vmem:[%s1777_s1 + $0xa4] sm:$0xf0]  ;;  %v728_v12 = vld [vmem:[%s1777_s1 + $0x20] sm:$0xf]  ;;  %v1285_v16 = vor.u32 %v1001_v8, %v864_v7 }
  0x11   :  { %468 = vmatpush.bf16.msra.mxu3 %v1208_v54  ;;  %456 = vmatpush.bf16.msra.mxu2 %v1210_v55  ;;  %v967_v13 = vld [vmem:[%s1777_s1 + $0x24] sm:$0xf0]  ;;  %v928_v18 = vld [vmem:[%s1777_s1 + $0x1b0] sm:$0xf]  ;;  %v1291_v19 = vor.u32 %v983_v10, %v792_v9  ;;  %v1017_v20 = vld [vmem:[%s1777_s1 + $0x1b4] sm:$0xf0] }
  0x12   :  { %444 = vmatpush.bf16.msra.mxu1 %v1216_v57  ;;  %v856_v21 = vld [vmem:[%s1777_s1 + $0x120] sm:$0xf]  ;;  %v999_v22 = vld [vmem:[%s1777_s1 + $0x124] sm:$0xf0]  ;;  %v784_v25 = vld [vmem:[%s1777_s1 + $0x90] sm:$0xf]  ;;  %v1309_v27 = vor.u32 %v967_v13, %v728_v12  ;;  %v1319_v32 = vor.u32 %v1017_v20, %v928_v18 }
  0x13   :  { %431 = vmatpush.bf16.msra.mxu0 %v1234_v63  ;;  %v981_v26 = vld [vmem:[%s1777_s1 + $0x94] sm:$0xf0]  ;;  %v720_v28 = vld [vmem:[%s1777_s1 + $0x10] sm:$0xf]  ;;  %v1321_v33 = vor.u32 %v999_v22, %v856_v21  ;;  %v920_v34 = vld [vmem:[%s1777_s1 + $0x1a0] sm:$0xf] }
  0x14   :  { %v965_v30 = vld [vmem:[%s1777_s1 + $0x14] sm:$0xf0]  ;;  %v1327_v36 = vor.u32 %v981_v26, %v784_v25  ;;  %v1015_v37 = vld [vmem:[%s1777_s1 + $0x1a4] sm:$0xf0]  ;;  %v848_v38 = vld [vmem:[%s1777_s1 + $0x110] sm:$0xf]  ;;  %v354_v26 = vpack.c.b16 %v290_v1, %v290_v1 }
  0x15   :  { %469 = vmatpush.bf16.msra.mxu3 %v1247_v2  ;;  %457 = vmatpush.bf16.msra.mxu2 %v1249_v3  ;;  %v997_v40 = vld [vmem:[%s1777_s1 + $0x114] sm:$0xf0]  ;;  %v776_v41 = vld [vmem:[%s1777_s1 + $0x80] sm:$0xf]  ;;  %v979_v43 = vld [vmem:[%s1777_s1 + $0x84] sm:$0xf0]  ;;  %v1348_v45 = vor.u32 %v965_v30, %v720_v28  ;;  %v1361_v52 = vor.u32 %v1015_v37, %v920_v34 }
  0x16   :  { %445 = vmatpush.bf16.msra.mxu1 %v1255_v5  ;;  %v992_v44 = vld [vmem:[%s1777_s1 + $0xf4] sm:$0xf]  ;;  %v834_v47 = vld [vmem:[%s1777_s1 + $0xf8] sm:$0xf0]  ;;  %v712_v49 = vld [vmem:[%s1777_s1] sm:$0xf]  ;;  %v1363_v53 = vor.u32 %v997_v40, %v848_v38  ;;  %v1375_v60 = vor.u32 %v979_v43, %v776_v41 }
  0x17   :  { %432 = vmatpush.bf16.msra.mxu0 %v1273_v11  ;;  %v963_v50 = vld [vmem:[%s1777_s1 + $0x4] sm:$0xf0]  ;;  %v912_v56 = vld [vmem:[%s1777_s1 + $0x190] sm:$0xf]  ;;  %v976_v58 = vld [vmem:[%s1777_s1 + $0x74] sm:$0xf]  ;;  %v1387_v4 = vor.u32 %v992_v44, %v834_v47 }
  0x18   :  { %v770_v59 = vld [vmem:[%s1777_s1 + $0x78] sm:$0xf0]  ;;  %v1013_v61 = vld [vmem:[%s1777_s1 + $0x194] sm:$0xf0]  ;;  %v840_v62 = vld [vmem:[%s1777_s1 + $0x100] sm:$0xf]  ;;  %v1390_v6 = vor.u32 %v963_v50, %v712_v49 }
  0x19   :  { %470 = vmatpush.bf16.msra.mxu3 %v1283_v15  ;;  %458 = vmatpush.bf16.msra.mxu2 %v1285_v16  ;;  %v995_v0 = vld [vmem:[%s1777_s1 + $0x104] sm:$0xf0]  ;;  %v1008_v7 = vld [vmem:[%s1777_s1 + $0x174] sm:$0xf]  ;;  %v898_v8 = vld [vmem:[%s1777_s1 + $0x178] sm:$0xf0]  ;;  %v1404_v10 = vor.u32 %v976_v58, %v770_v59  ;;  %v1408_v12 = vor.u32 %v1013_v61, %v912_v56 }
  0x1a   :  { %446 = vmatpush.bf16.msra.mxu1 %v1291_v19  ;;  %v990_v9 = vld [vmem:[%s1777_s1 + $0xe4] sm:$0xf]  ;;  %v826_v24 = vld [vmem:[%s1777_s1 + $0xe8] sm:$0xf0]  ;;  %v1410_v13 = vor.u32 %v995_v0, %v840_v62  ;;  %v904_v21 = vld [vmem:[%s1777_s1 + $0x180] sm:$0xf]  ;;  %v1425_v25 = vor.u32 %v1008_v7, %v898_v8 }
  0x1b   :  { %433 = vmatpush.bf16.msra.mxu0 %v1309_v27  ;;  %v974_v18 = vld [vmem:[%s1777_s1 + $0x64] sm:$0xf]  ;;  %v762_v20 = vld [vmem:[%s1777_s1 + $0x68] sm:$0xf0]  ;;  %v1011_v22 = vld [vmem:[%s1777_s1 + $0x184] sm:$0xf0]  ;;  %v1428_v28 = vor.u32 %v990_v9, %v826_v24 }
  0x1c   :  { %v1006_v30 = vld [vmem:[%s1777_s1 + $0x164] sm:$0xf]  ;;  %v890_v34 = vld [vmem:[%s1777_s1 + $0x168] sm:$0xf0]  ;;  %v988_v37 = vld [vmem:[%s1777_s1 + $0xd4] sm:$0xf]  ;;  %v1444_v40 = vor.u32 %v974_v18, %v762_v20  ;;  %v1448_v41 = vor.u32 %v1011_v22, %v904_v21 }
  0x1d   :  { %471 = vmatpush.bf16.msra.mxu3 %v1319_v32  ;;  %459 = vmatpush.bf16.msra.mxu2 %v1321_v33  ;;  %v818_v38 = vld [vmem:[%s1777_s1 + $0xd8] sm:$0xf0]  ;;  %v972_v43 = vld [vmem:[%s1777_s1 + $0x54] sm:$0xf]  ;;  %v1458_v47 = vsel %vm421_vm0, %v354_v26, 0  ;;  %v1460_v49 = vor.u32 %v1006_v30, %v890_v34  ;;  %v15_v9 = vld [vmem:[%s1776_s0] sm:$0xff] }
  0x1e   :  { %447 = vmatpush.bf16.msra.mxu1 %v1327_v36  ;;  %v754_v44 = vld [vmem:[%s1777_s1 + $0x58] sm:$0xf0]  ;;  %v1022_v50 = vld [vmem:[%s1777_s1 + $0x1e4] sm:$0xf]  ;;  %v1466_v56 = vor.u32 %v988_v37, %v818_v38  ;;  %v954_v58 = vld [vmem:[%s1777_s1 + $0x1e8] sm:$0xf0] }
  0x1f   :  { %434 = vmatpush.bf16.msra.mxu0 %v1348_v45  ;;  %v1004_v59 = vld [vmem:[%s1777_s1 + $0x154] sm:$0xf]  ;;  %v882_v61 = vld [vmem:[%s1777_s1 + $0x158] sm:$0xf0]  ;;  %v986_v62 = vld [vmem:[%s1777_s1 + $0xc4] sm:$0xf]  ;;  %v1484_v1 = vor.u32 %v972_v43, %v754_v44  ;;  %v1502_v18 = vor.u32 %v1022_v50, %v954_v58 }
  0x20   :  { %v810_v0 = vld [vmem:[%s1777_s1 + $0xc8] sm:$0xf0]  ;;  %v970_v7 = vld [vmem:[%s1777_s1 + $0x44] sm:$0xf]  ;;  %v1504_v20 = vor.u32 %v1004_v59, %v882_v61  ;;  %v1020_v21 = vld [vmem:[%s1777_s1 + $0x1d4] sm:$0xf] }
  0x21   :  { %472 = vmatpush.bf16.msra.mxu3 %v1361_v52  ;;  %460 = vmatpush.bf16.msra.mxu2 %v1363_v53  ;;  %v746_v8 = vld [vmem:[%s1777_s1 + $0x48] sm:$0xf0]  ;;  %v1510_v26 = vor.u32 %v986_v62, %v810_v0  ;;  %v946_v30 = vld [vmem:[%s1777_s1 + $0x1d8] sm:$0xf0]  ;;  %v1002_v34 = vld [vmem:[%s1777_s1 + $0x144] sm:$0xf] }
  0x22   :  { %448 = vmatpush.bf16.msra.mxu1 %v1375_v60  ;;  %v16_v24 = vld [vmem:[%s1776_s0 + $0x8] sm:$0xff]  ;;  %v984_v38 = vld [vmem:[%s1777_s1 + $0xb4] sm:$0xf]  ;;  %v802_v43 = vld [vmem:[%s1777_s1 + $0xb8] sm:$0xf0]  ;;  %v1528_v44 = vor.u32 %v970_v7, %v746_v8  ;;  %v1540_v62 = vor.u32 %v1020_v21, %v946_v30 }
  0x23   :  { %435 = vmatpush.bf16.msra.mxu0 %v1390_v6  ;;  %v22_v22 = vpack.c.bf16 %v16_v24, %v15_v9  ;;  %1791 = vst [vmem:[#allocation5_spill] sm:$0xff] %v1510_v26  ;;  %v874_v37 = vld [vmem:[%s1777_s1 + $0x148] sm:$0xf0]  ;;  %v968_v59 = vld [vmem:[%s1777_s1 + $0x34] sm:$0xf] }
  0x24   :  { %1792 = vst [vmem:[#allocation6_spill] sm:$0xff] %v1528_v44  ;;  %v738_v61 = vld [vmem:[%s1777_s1 + $0x38] sm:$0xf0]  ;;  %v1542_v0 = vor.u32 %v1002_v34, %v874_v37  ;;  %v1018_v7 = vld [vmem:[%s1777_s1 + $0x1c4] sm:$0xf] }
  0x25   :  { %473 = vmatpush.bf16.msra.mxu3 %v1408_v12  ;;  %461 = vmatpush.bf16.msra.mxu2 %v1410_v13  ;;  %v92_v50 = vunpack.c.h.b16 %v22_v22  ;;  %v91_v58 = vunpack.c.l.b16 %v22_v22  ;;  %1793 = vst [vmem:[#allocation7_spill] sm:$0xff] %v1540_v62 }
  0x26   :  { %493 = vmatpush.bf16.msrb.mxu1 %v1387_v4  ;;  %1794 = vst [vmem:[#allocation8_spill] sm:$0xff] %v1542_v0 }
  0x27   :  { %480 = vmatpush.bf16.msrb.mxu0 %v1404_v10  ;;  %v1547_v8 = vpack.c.b16 %v92_v50, %v92_v50 }
  0x28   :  { %462 = vmatmul.bf16.vlgmr.msra.gmra.mxu2 %v1198_v51 }
  0x29   :  { %506 = vmatpush.bf16.msrb.mxu2 %v1425_v25  ;;  %474 = vmatpush.bf16.msra.mxu3 %v1448_v41 }
  0x2a   :  { %494 = vmatpush.bf16.msrb.mxu1 %v1428_v28 }
  0x2b   :  { %481 = vmatpush.bf16.msrb.mxu0 %v1444_v40 }
  0x2c   :  { %958 = vmatmul.msk.bf16.vlgmr.msra.gmra.mxu3 %vm417_vm1, %v1148_v31 }
  0x2d   :  { %519 = vmatpush.bf16.msrb.mxu3 %v1458_v47  ;;  %507 = vmatpush.bf16.msrb.mxu2 %v1460_v49 }
  0x2e   :  { %495 = vmatpush.bf16.msrb.mxu1 %v1466_v56 }
  0x2f   :  { %482 = vmatpush.bf16.msrb.mxu0 %v1484_v1 }
  0x31   :  { %520 = vmatpush.bf16.msrb.mxu3 %v1502_v18  ;;  %508 = vmatpush.bf16.msrb.mxu2 %v1504_v20 }
  0x32   :  { %8 = vsyncpa [#allocation3], 0  ;;  %496 = vmatpush.bf16.msrb.mxu1 %v1510_v26  ;;  %v1550_v9 = vor.u32 %v984_v38, %v802_v43  ;;  %v938_v24 = vld [vmem:[%s1777_s1 + $0x1c8] sm:$0xf0]  ;;  %v1000_v21 = vld [vmem:[%s1777_s1 + $0x134] sm:$0xf]  ;;  %v1561_v30 = vpack.c.b16 %v91_v58, %v91_v58  ;;  %v1570_v38 = vor.u32 %v968_v59, %v738_v61 }
  0x33   :  { %v866_v22 = vld [vmem:[%s1777_s1 + $0x138] sm:$0xf0]  ;;  %483 = vmatpush.bf16.msrb.mxu0 %v1528_v44  ;;  %v982_v34 = vld [vmem:[%s1777_s1 + $0xa4] sm:$0xf]  ;;  %v794_v37 = vld [vmem:[%s1777_s1 + $0xa8] sm:$0xf0]  ;;  %449 = vmatmul.bf16.vlgmr.msra.gmra.mxu1 %v1547_v8  ;;  %v1582_v58 = vor.u32 %v1018_v7, %v938_v24 }
  0x34   :  { %1795 = vst [vmem:[#allocation9_spill] sm:$0xff] %v1550_v9  ;;  %v966_v43 = vld [vmem:[%s1777_s1 + $0x24] sm:$0xf]  ;;  %v730_v50 = vld [vmem:[%s1777_s1 + $0x28] sm:$0xf0]  ;;  %436 = vmatmul.bf16.vlgmr.msra.gmra.mxu0 %v1561_v30  ;;  %v1584_v59 = vor.u32 %v1000_v21, %v866_v22  ;;  %v1590_v44 = vor.u32 %v982_v34, %v794_v37  ;;  %vm550_vm2 = vcmask 687104  }
  0x35   :  { %1796 = vst [vmem:[#allocation10_spill] sm:$0xff] %v1570_v38  ;;  %521 = vmatpush.bf16.msrb.mxu3 %v1540_v62  ;;  %509 = vmatpush.bf16.msrb.mxu2 %v1542_v0  ;;  %v1016_v61 = vld [vmem:[%s1777_s1 + $0x1b4] sm:$0xf]  ;;  %v930_v26 = vld [vmem:[%s1777_s1 + $0x1b8] sm:$0xf0]  ;;  %v1608_v22 = vor.u32 %v966_v43, %v730_v50  ;;  %s1058_s5 = smov 64  }
  0x36   :  { %1797 = vst [vmem:[#allocation11_spill] sm:$0xff] %v1582_v58  ;;  %497 = vmatpush.bf16.msrb.mxu1 %v1550_v9  ;;  %v998_v0 = vld [vmem:[%s1777_s1 + $0x124] sm:$0xf]  ;;  %v858_v7 = vld [vmem:[%s1777_s1 + $0x128] sm:$0xf0]  ;;  %s1059_s6 = smov 96  }
  0x37   :  { %1798 = vst [vmem:[#allocation12_spill] sm:$0xff] %v1584_v59  ;;  %484 = vmatpush.bf16.msrb.mxu0 %v1570_v38  ;;  %v980_v24 = vld [vmem:[%s1777_s1 + $0x94] sm:$0xf]  ;;  %v786_v21 = vld [vmem:[%s1777_s1 + $0x98] sm:$0xf0]  ;;  %v1618_v38 = vor.u32 %v1016_v61, %v930_v26  ;;  %v1620_v9 = vor.u32 %v998_v0, %v858_v7  ;;  %s1060_s9 = smov [#allocation2]  }
  0x38   :  { %1799 = vst [vmem:[#allocation13_spill] sm:$0xff] %v1590_v44  ;;  %v964_v34 = vld [vmem:[%s1777_s1 + $0x14] sm:$0xf]  ;;  %v722_v37 = vld [vmem:[%s1777_s1 + $0x18] sm:$0xf0]  ;;  %v1626_v50 = vor.u32 %v980_v24, %v786_v21  ;;  %s699_s10 = sshll.u32 %s1060_s9, 4  ;;  %s700_s10 = int_to_ptr.vmem [resolvable:$true] %s699_s10 }
  0x39   :  { %1800 = vst [vmem:[#allocation14_spill] sm:$0xff] %v1608_v22  ;;  %522 = vmatpush.bf16.msrb.mxu3 %v1582_v58  ;;  %510 = vmatpush.bf16.msrb.mxu2 %v1584_v59  ;;  %v1014_v43 = vld [vmem:[%s1777_s1 + $0x1a4] sm:$0xf]  ;;  %v922_v62 = vld [vmem:[%s1777_s1 + $0x1a8] sm:$0xf0]  ;;  %v1644_v7 = vor.u32 %v964_v34, %v722_v37  ;;  %s701_s12 = sshll.u32 %s1779_s3, 4  ;;  %s702_s12 = int_to_ptr.hbm [resolvable:$true] %s701_s12 }
  0x3a   :  { %1801 = vst [vmem:[#allocation15_spill] sm:$0xff] %v1620_v9  ;;  %498 = vmatpush.bf16.msrb.mxu1 %v1590_v44  ;;  %v996_v59 = vld [vmem:[%s1777_s1 + $0x114] sm:$0xf]  ;;  %v850_v26 = vld [vmem:[%s1777_s1 + $0x118] sm:$0xf0]  ;;  %vm692_vm3 = vcmask 261120  }
  0x3b   :  { %485 = vmatpush.bf16.msrb.mxu0 %v1608_v22  ;;  %v978_v0 = vld [vmem:[%s1777_s1 + $0x84] sm:$0xf]  ;;  %v778_v61 = vld [vmem:[%s1777_s1 + $0x88] sm:$0xf0]  ;;  %v1654_v22 = vor.u32 %v1014_v43, %v922_v62  ;;  %v1656_v44 = vor.u32 %v996_v59, %v850_v26  ;;  %v1012_v34 = vld [vmem:[%s1777_s1 + $0x194] sm:$0xf] }
  0x3c   :  { %v962_v24 = vld [vmem:[%s1777_s1 + $0x4] sm:$0xf]  ;;  %v714_v21 = vld [vmem:[%s1777_s1 + $0x8] sm:$0xf0]  ;;  %v1662_v37 = vor.u32 %v978_v0, %v778_v61  ;;  %v914_v58 = vld [vmem:[%s1777_s1 + $0x198] sm:$0xf0] }
  0x3d   :  { %523 = vmatpush.bf16.msrb.mxu3 %v1618_v38  ;;  %511 = vmatpush.bf16.msrb.mxu2 %v1620_v9  ;;  %v994_v9 = vld [vmem:[%s1777_s1 + $0x104] sm:$0xf]  ;;  %v842_v62 = vld [vmem:[%s1777_s1 + $0x108] sm:$0xf0]  ;;  %v1674_v59 = vor.u32 %v962_v24, %v714_v21  ;;  %v1678_v43 = vor.u32 %v1012_v34, %v914_v58 }
  0x3e   :  { %499 = vmatpush.bf16.msrb.mxu1 %v1626_v50  ;;  %v1680_v26 = vor.u32 %v994_v9, %v842_v62  ;;  %v1010_v0 = vld [vmem:[%s1777_s1 + $0x184] sm:$0xf]  ;;  %v906_v61 = vld [vmem:[%s1777_s1 + $0x188] sm:$0xf0]  ;;  %s1057_s1 = smov 32  }
  0x3f   :  { %486 = vmatpush.bf16.msrb.mxu0 %v1644_v7  ;;  %v1694_v9 = vor.u32 %v1010_v0, %v906_v61 }
  0x41   :  { %524 = vmatpush.bf16.msrb.mxu3 %v1654_v22  ;;  %512 = vmatpush.bf16.msrb.mxu2 %v1656_v44 }
  0x42   :  { %500 = vmatpush.bf16.msrb.mxu1 %v1662_v37 }
  0x43   :  { %487 = vmatpush.bf16.msrb.mxu0 %v1674_v59 }
  0x45   :  { %525 = vmatpush.bf16.msrb.mxu3 %v1678_v43  ;;  %513 = vmatpush.bf16.msrb.mxu2 %v1680_v26 }
  0x46   :  { %574 = vmatpush.bf16.msra.mxu1 %v1108_v14  ;;  %488 = vmatmul.bf16.vlgmr.msrb.gmra.mxu0 %v1561_v30  ;;  %v1802_v14 = vld [vmem:[#allocation5_spill] sm:$0xff] }
  0x47   :  { %561 = vmatpush.bf16.msra.mxu0 %v1116_v17  ;;  %501 = vmatmul.bf16.vlgmr.msrb.gmra.mxu1 %v1547_v8  ;;  %v1803_v17 = vld [vmem:[#allocation6_spill] sm:$0xff] }
  0x48   :  { %514 = vmatmul.bf16.vlgmr.msrb.gmra.mxu2 %v1198_v51  ;;  %v1812_v51 = vld [vmem:[#allocation15_spill] sm:$0xff] }
  0x49   :  { %587 = vmatpush.bf16.msra.mxu2 %v1145_v29  ;;  %526 = vmatpush.bf16.msrb.mxu3 %v1694_v9  ;;  %v1805_v29 = vld [vmem:[#allocation8_spill] sm:$0xff] }
  0x4a   :  { %575 = vmatpush.bf16.msra.mxu1 %v1125_v23  ;;  %v1804_v23 = vld [vmem:[#allocation7_spill] sm:$0xff] }
  0x4b   :  { %562 = vmatpush.bf16.msra.mxu0 %v1155_v35  ;;  %v1807_v35 = vld [vmem:[#allocation10_spill] sm:$0xff] }
  0x4c   :  { %959 = vmatmul.msk.bf16.vlgmr.msrb.gmra.mxu3 %vm417_vm1, %v1148_v31  ;;  %v1806_v31 = vld [vmem:[#allocation9_spill] sm:$0xff] }
  0x4d   :  { %600 = vmatpush.bf16.msra.mxu3 %v1187_v46  ;;  %588 = vmatpush.bf16.msra.mxu2 %v1166_v39  ;;  %v1808_v39 = vld [vmem:[#allocation11_spill] sm:$0xff]  ;;  %v1810_v46 = vld [vmem:[#allocation13_spill] sm:$0xff] }
  0x4e   :  { %576 = vmatpush.bf16.msra.mxu1 %v1175_v42  ;;  %v1809_v42 = vld [vmem:[#allocation12_spill] sm:$0xff] }
  0x4f   :  { %563 = vmatpush.bf16.msra.mxu0 %v1193_v48  ;;  %v1811_v48 = vld [vmem:[#allocation14_spill] sm:$0xff] }
  0x51   :  { %601 = vmatpush.bf16.msra.mxu3 %v1208_v54  ;;  %589 = vmatpush.bf16.msra.mxu2 %v1210_v55 }
  0x52   :  { %577 = vmatpush.bf16.msra.mxu1 %v1216_v57 }
  0x53   :  { %564 = vmatpush.bf16.msra.mxu0 %v1234_v63 }
  0x55   :  { %602 = vmatpush.bf16.msra.mxu3 %v1247_v2  ;;  %590 = vmatpush.bf16.msra.mxu2 %v1249_v3 }
  0x56   :  { %578 = vmatpush.bf16.msra.mxu1 %v1255_v5 }
  0x57   :  { %565 = vmatpush.bf16.msra.mxu0 %v1273_v11 }
  0x59   :  { %603 = vmatpush.bf16.msra.mxu3 %v1283_v15  ;;  %591 = vmatpush.bf16.msra.mxu2 %v1285_v16 }
  0x5a   :  { %579 = vmatpush.bf16.msra.mxu1 %v1291_v19 }
  0x5b   :  { %566 = vmatpush.bf16.msra.mxu0 %v1309_v27 }
  0x5d   :  { %604 = vmatpush.bf16.msra.mxu3 %v1319_v32  ;;  %592 = vmatpush.bf16.msra.mxu2 %v1321_v33 }
  0x5e   :  { %580 = vmatpush.bf16.msra.mxu1 %v1327_v36 }
  0x5f   :  { %567 = vmatpush.bf16.msra.mxu0 %v1348_v45 }
  0x61   :  { %605 = vmatpush.bf16.msra.mxu3 %v1361_v52  ;;  %593 = vmatpush.bf16.msra.mxu2 %v1363_v53 }
  0x62   :  { %581 = vmatpush.bf16.msra.mxu1 %v1375_v60 }
  0x63   :  { %568 = vmatpush.bf16.msra.mxu0 %v1390_v6  ;;  %v543_v54 = vpop.permute.xlu2 %542 }
  0x65   :  { %606 = vmatpush.bf16.msra.mxu3 %v1408_v12  ;;  %594 = vmatpush.bf16.msra.mxu2 %v1410_v13 }
  0x66   :  { %626 = vmatpush.bf16.msrb.mxu1 %v1387_v4 }
  0x67   :  { %613 = vmatpush.bf16.msrb.mxu0 %v1404_v10 }
  0x69   :  { %639 = vmatpush.bf16.msrb.mxu2 %v1425_v25  ;;  %607 = vmatpush.bf16.msra.mxu3 %v1448_v41 }
  0x6a   :  { %627 = vmatpush.bf16.msrb.mxu1 %v1428_v28 }
  0x6b   :  { %614 = vmatpush.bf16.msrb.mxu0 %v1444_v40 }
  0x6d   :  { %652 = vmatpush.bf16.msrb.mxu3 %v1458_v47  ;;  %640 = vmatpush.bf16.msrb.mxu2 %v1460_v49 }
  0x6e   :  { %628 = vmatpush.bf16.msrb.mxu1 %v1466_v56 }
  0x6f   :  { %615 = vmatpush.bf16.msrb.mxu0 %v1484_v1 }
  0x71   :  { %653 = vmatpush.bf16.msrb.mxu3 %v1502_v18  ;;  %641 = vmatpush.bf16.msrb.mxu2 %v1504_v20 }
  0x72   :  { %629 = vmatpush.bf16.msrb.mxu1 %v1802_v14 }
  0x73   :  { %616 = vmatpush.bf16.msrb.mxu0 %v1803_v17 }
  0x75   :  { %654 = vmatpush.bf16.msrb.mxu3 %v1804_v23  ;;  %642 = vmatpush.bf16.msrb.mxu2 %v1805_v29 }
  0x76   :  { %630 = vmatpush.bf16.msrb.mxu1 %v1806_v31 }
  0x77   :  { %617 = vmatpush.bf16.msrb.mxu0 %v1807_v35 }
  0x79   :  { %655 = vmatpush.bf16.msrb.mxu3 %v1808_v39  ;;  %643 = vmatpush.bf16.msrb.mxu2 %v1809_v42 }
  0x7a   :  { %631 = vmatpush.bf16.msrb.mxu1 %v1810_v46  ;;  %v549_v55 = vpop.permute.xlu1 %548  ;;  %v545_v57 = vpop.permute.xlu0 %544 }
  0x7b   :  { %618 = vmatpush.bf16.msrb.mxu0 %v1811_v48  ;;  %v552_v63 = vsel %vm550_vm2, %v543_v54, %v545_v57  ;;  %v1029_v48 = vld [vmem:[%s1778_s2] ss:$0 sm:$0xff] }
  0x7c   :  { %582 = vmatmul.bf16.vlgmr.msra.gmra.mxu1 %v552_v63 }
  0x7d   :  { %656 = vmatpush.bf16.msrb.mxu3 %v1618_v38  ;;  %644 = vmatpush.bf16.msrb.mxu2 %v1812_v51 }
  0x7e   :  { %632 = vmatpush.bf16.msrb.mxu1 %v1626_v50 }
  0x7f   :  { %619 = vmatpush.bf16.msrb.mxu0 %v1644_v7 }
  0x81   :  { %657 = vmatpush.bf16.msrb.mxu3 %v1654_v22  ;;  %645 = vmatpush.bf16.msrb.mxu2 %v1656_v44 }
  0x82   :  { %633 = vmatpush.bf16.msrb.mxu1 %v1662_v37  ;;  %v547_v2 = vpop.permute.xlu0 %546  ;;  %v541_v3 = vpop.permute.xlu1 %540 }
  0x83   :  { %620 = vmatpush.bf16.msrb.mxu0 %v1674_v59  ;;  %v553_v5 = vsel %vm550_vm2, %v545_v57, %v547_v2  ;;  %v554_v11 = vsel %vm550_vm2, %v547_v2, %v549_v55  ;;  %v551_v15 = vsel %vm550_vm2, %v541_v3, %v543_v54 }
  0x84   :  { %569 = vmatmul.bf16.vlgmr.msra.gmra.mxu0 %v551_v15  ;;  %595 = vmatmul.bf16.vlgmr.msra.gmra.mxu2 %v553_v5 }
  0x85   :  { %658 = vmatpush.bf16.msrb.mxu3 %v1678_v43  ;;  %646 = vmatpush.bf16.msrb.mxu2 %v1680_v26 }
  0x86   :  { %960 = vmatmul.msk.bf16.vlgmr.msra.gmra.mxu3 %vm417_vm1, %v554_v11 }
  0x89   :  { %659 = vmatpush.bf16.msrb.mxu3 %v1694_v9 }
  0x8c   :  { %634 = vmatmul.bf16.vlgmr.msrb.gmra.mxu1 %v552_v63 }
  0x94   :  { %621 = vmatmul.bf16.vlgmr.msrb.gmra.mxu0 %v551_v15  ;;  %647 = vmatmul.bf16.vlgmr.msrb.gmra.mxu2 %v553_v5 }
  0x96   :  { %961 = vmatmul.msk.bf16.vlgmr.msrb.gmra.mxu3 %vm417_vm1, %v554_v11 }
  0xab   :  { %v463_v16 = vpop.f32.mrf.mxu2 }
  0xaf   :  { %v476_v33 = vpop.f32.mrf.mxu3 }
  0xb0   :  { %v450_v19 = vpop.f32.mrf.mxu1 }
  0xb1   :  { %v437_v27 = vpop.f32.mrf.mxu0 }
  0xb2   :  { %v451_v32 = vadd.f32 %v450_v19, %v437_v27 }
  0xb3   :  { %v465_v52 = vpop.f32.mrf.mxu2 }
  0xb4   :  { %v464_v36 = vadd.f32 %v463_v16, %v451_v32 }
  0xb6   :  { %v477_v45 = vadd.f32 %v476_v33, %v464_v36 }
  0xb7   :  { %v478_v4 = vpop.f32.mrf.mxu3 }
  0xb8   :  { %v452_v53 = vpop.f32.mrf.mxu1 }
  0xb9   :  { %v439_v60 = vpop.f32.mrf.mxu0 }
  0xc3   :  { %v489_v10 = vpop.f32.mrf.mxu0 }
  0xc4   :  { %v502_v6 = vpop.f32.mrf.mxu1 }
  0xc5   :  { %v503_v12 = vadd.f32 %v502_v6, %v489_v10 }
  0xcb   :  { %v515_v13 = vpop.f32.mrf.mxu2  ;;  %v491_v40 = vpop.f32.mrf.mxu0 }
  0xcc   :  { %v504_v25 = vpop.f32.mrf.mxu1  ;;  %v516_v28 = vadd.f32 %v515_v13, %v503_v12 }
  0xcf   :  { %v528_v41 = vpop.f32.mrf.mxu3 }
  0xd0   :  { %v529_v47 = vadd.f32 %v528_v41, %v516_v28 }
  0xd3   :  { %v517_v49 = vpop.f32.mrf.mxu2 }
  0xd7   :  { %v530_v56 = vpop.f32.mrf.mxu3 }
  0xf9   :  { %v583_v1 = vpop.f32.mrf.mxu1 }
 0x101   :  { %v570_v18 = vpop.f32.mrf.mxu0  ;;  %v585_v20 = vpop.f32.mrf.mxu1 }
 0x102   :  { %v584_v44 = vadd.f32 %v583_v1, %v570_v18 }
 0x107   :  { %v596_v8 = vpop.f32.mrf.mxu2 }
 0x108   :  { %v597_v30 = vadd.f32 %v596_v8, %v584_v44 }
 0x109   :  { %v609_v38 = vpop.f32.mrf.mxu3  ;;  %v572_v58 = vpop.f32.mrf.mxu0 }
 0x10a   :  { %v635_v22 = vpop.f32.mrf.mxu1  ;;  %v610_v50 = vadd.f32 %v609_v38, %v597_v30 }
 0x10c   :  { %v665_v7 = vmax.f32 %v477_v45, %v610_v50 }
 0x10e   :  { %676 = vrot.lane.b32.xlu1 %v665_v7, %s1057_s1  ;;  %672 = vrot.lane.b32.xlu0 %v665_v7, %s1058_s5 }
 0x10f   :  { %668 = vrot.lane.b32.xlu2 %v665_v7, %s1059_s6  ;;  %v598_v24 = vpop.f32.mrf.mxu2 }
 0x111   :  { %v611_v21 = vpop.f32.mrf.mxu3  ;;  %v622_v34 = vpop.f32.mrf.mxu0 }
 0x112   :  { %v637_v37 = vpop.f32.mrf.mxu1  ;;  %v636_v62 = vadd.f32 %v635_v22, %v622_v34 }
 0x117   :  { %v648_v59 = vpop.f32.mrf.mxu2 }
 0x118   :  { %v649_v43 = vadd.f32 %v648_v59, %v636_v62 }
 0x119   :  { %v661_v26 = vpop.f32.mrf.mxu3  ;;  %v624_v0 = vpop.f32.mrf.mxu0 }
 0x11a   :  { %v662_v61 = vadd.f32 %v661_v26, %v649_v43 }
 0x11c   :  { %v666_v9 = vmax.f32 %v529_v47, %v662_v61 }
 0x11e   :  { %682 = vrot.lane.b32.xlu2 %v666_v9, %s1059_s6 }
 0x11f   :  { %v650_v14 = vpop.f32.mrf.mxu2 }
 0x121   :  { %v663_v17 = vpop.f32.mrf.mxu3 }
 0x169   :  { %v669_v23 = vpop.permute.xlu2 %668 }
 0x16a   :  { %v671_v29 = vmax.f32 %v665_v7, %v669_v23 }
 0x178   :  { %v683_v51 = vpop.permute.xlu2 %682 }
 0x180   :  { %v673_v31 = vpop.permute.xlu0 %672  ;;  %v677_v39 = vpop.permute.xlu1 %676 }
 0x181   :  { %v675_v35 = vmax.f32 %v671_v29, %v673_v31 }
 0x183   :  { %v679_v42 = vmax.f32 %v675_v35, %v677_v39 }
 0x185   :  { %v680_v46 = vmax.f32 %v679_v42, %v666_v9 }
 0x187   :  { %v685_v54 = vmax.f32 %v680_v46, %v683_v51 }
 0x189   :  { %v690_v55 = vadd.f32 %v1029_v48, %v685_v54 }
 0x18b   :  { %v691_v57 = vmax.f32 %v690_v55, 0.0 }
 0x18d   :  { %693 = vst.msk [vmem:[#allocation2] sm:$0xff] %vm692_vm3, %v691_v57 }
 0x18e   :  { %704 = dma.vmem_to_hbm [thread:$0]  %s700_s10, 128, %s702_s12, [#allocation3]  }
 0x18f   :  { %1054 = dma.done.wait [#allocation3], 128  }
 0x190   :  { %1055 = vsyncadd [#allocation3], 4294967168 }
 0x191   :  { %709 = vsyncpa [#allocation3], 1 }

</bundles_post_ra>
